<compile_context>
chip_gen: v5e
topology: v5e:2x2
jax: 0.10.0
libtpu: 0.0.40
codegen_flags: <defaults>
</compile_context>

<pallas_src>
import jax
import jax.numpy as jnp
from jax.experimental import pallas as pl
from jax.experimental.pallas import tpu as pltpu


def _make_kernel(B_blk, C, Lp, L_valid, use_mxu):
    """Builds the fused residual-block kernel body for one (B_blk, C, Lp) block."""

    def kernel(x_ref, w1_ref, w2_ref, o_ref):
        w1 = w1_ref[...]
        w2 = w2_ref[...]

        def stack_taps(v):
            # v: (C, Lp) -> (3C, Lp) = [v_{l-1}; v_l; v_{l+1}] with the
            # Conv1d(padding=1) zero boundary.  Shifts run on the XLU
            # (pltpu.roll); the boundary is one select per shifted copy.
            lane = jax.lax.broadcasted_iota(jnp.int32, v.shape, 1)
            zeros = jnp.zeros_like(v)
            v_m1 = jnp.where(lane == 0, zeros, pltpu.roll(v, shift=1, axis=1))
            v_p1 = jnp.where(lane == Lp - 1, zeros,
                             pltpu.roll(v, shift=Lp - 1, axis=1))
            return jnp.concatenate([v_m1, v, v_p1], axis=0)

        def conv3(v, w):
            # k=3 "same" conv as a single K=3C contraction, f32 accumulation.
            s = stack_taps(v)
            if use_mxu:
                return jnp.dot(w, s, preferred_element_type=jnp.float32)
            # Small-C path: MXU would be nearly all padding, so do the
            # contraction on the VPU: (Cout,3C,1)*(1,3C,Lp) -> sublane reduce.
            prod = w.astype(jnp.float32) * s[None, :, :].astype(jnp.float32)
            return jnp.sum(prod, axis=1)                     # (Cout, Lp) f32

        # Unrolled loop over the batch elements of this block amortizes the
        # per-grid-step overhead; each element's stacked operands / f32
        # accumulators are consumed before the next ones are built.
        for b in range(B_blk):
            xb = x_ref[b]                                    # (C, Lp)
            h = jnp.maximum(conv3(xb, w1), 0.0)              # relu(conv1(x)), f32
            if L_valid != Lp:
                # Zero the L-padding tail so conv2's taps see the correct
                # Conv1d zero padding at the true sequence boundary.
                lane = jax.lax.broadcasted_iota(jnp.int32, h.shape, 1)
                h = jnp.where(lane < L_valid, h, 0.0)
            h = h.astype(xb.dtype)                           # model dtype into MXU
            out = conv3(h, w2) + xb.astype(jnp.float32)      # conv2 + identity shortcut
            o_ref[b] = jnp.maximum(out, 0.0).astype(o_ref.dtype)

    return kernel


def basic_block_1d_bn(x, w1, w2):
    """Fused forward of BasicBlock1DBN (default config).

    x: (N, C, L);  w1, w2: PyTorch Conv1d weights of shape (C, C, 3).
    out = relu(conv2(relu(conv1(x))) + x)
    """
    N, C, L = x.shape
    assert w1.shape == (C, C, 3) and w2.shape == (C, C, 3), (
        "default config requires in_planes == planes and kernel_size == 3")
    # TODO(synk): group_norm=True (BatchNorm1d), stride != 1 and the 1x1
    # projection shortcut are not implemented (default ctor args only).

    itemsize = x.dtype.itemsize

    # Lane-dense sequence axis: pad L up to a multiple of 128 so stores are
    # full (unmasked) vst's; the wrapper slices the padding back off.
    Lp = max(128, ((L + 127) // 128) * 128)
    x_p = x if Lp == L else jnp.pad(x, ((0, 0), (0, 0), (0, Lp - L)))

    # Several batch elements per grid step: largest divisor of N <= 8 whose
    # input block stays small (keeps double-buffered working set tiny).
    B_blk = 1
    for b in range(min(N, 8), 0, -1):
        if N % b == 0 and b * C * Lp * itemsize <= (2 << 20):
            B_blk = b
            break

    # Taps stacked into the contraction axis: (Cout, Cin, 3) -> (Cout, 3*Cin);
    # column block k holds tap k, matching the stacked [x_{l-1}; x_l; x_{l+1}]
    # operand built in the kernel.  Tiny host-side permute; activations keep
    # their NCL layout end-to-end (no extra HBM passes).
    def stack_w(w):
        return jnp.transpose(w, (0, 2, 1)).reshape(C, 3 * C).astype(x.dtype)

    w1_s, w2_s = stack_w(w1), stack_w(w2)

    # Small-C dispatch: below ~32 channels the MXU is almost entirely padding.
    use_mxu = (C >= 32) or (C * 3 * C * Lp * 4 > (4 << 20))
    if use_mxu:
        w_spec = pl.BlockSpec((C, 3 * C), lambda n: (0, 0))
    else:
        # Trailing unit lane dim so the kernel can broadcast-MAC without any
        # in-kernel relayout of the weight.
        w1_s = w1_s.reshape(C, 3 * C, 1)
        w2_s = w2_s.reshape(C, 3 * C, 1)
        w_spec = pl.BlockSpec((C, 3 * C, 1), lambda n: (0, 0, 0))

    kernel = _make_kernel(B_blk, C, Lp, L, use_mxu)

    cost = pl.CostEstimate(
        flops=12 * N * C * C * Lp,                      # 2 convs * 2*(3C) MACs / output
        transcendentals=0,
        bytes_accessed=(2 * N * C * Lp + 2 * 3 * C * C) * itemsize,
    )

    out_p = pl.pallas_call(
        kernel,
        out_shape=jax.ShapeDtypeStruct((N, C, Lp), x.dtype),
        grid_spec=pltpu.PrefetchScalarGridSpec(
            num_scalar_prefetch=0,
            grid=(N // B_blk,),                         # B_blk batch elements per step
            in_specs=[
                pl.BlockSpec((B_blk, C, Lp), lambda n: (n, 0, 0)),
                w_spec,        # constant index_map -> fetched once, VMEM resident
                w_spec,
            ],
            out_specs=pl.BlockSpec((B_blk, C, Lp), lambda n: (n, 0, 0)),
        ),
        compiler_params=pltpu.CompilerParams(
            dimension_semantics=("parallel",),          # shard batch blocks across TCs
            # Working set is small; 32 MiB leaves ample headroom on v7x (64 MiB
            # physical) while staying above v5e's 16 MiB scoped default.
            vmem_limit_bytes=32 * 1024 * 1024,
        ),
        cost_estimate=cost,
    )(x_p, w1_s, w2_s)

    return out_p if Lp == L else out_p[:, :, :L]


def _reference(x, w1, w2):
    # Pure-JAX reference mirroring the kernel's dtype handling
    # (f32 accumulation, model-dtype intermediate activation).
    def conv(v, w):
        return jax.lax.conv_general_dilated(
            v, w.astype(v.dtype), window_strides=(1,), padding=((1, 1),),
            dimension_numbers=("NCH", "OIH", "NCH"),
            preferred_element_type=jnp.float32)

    h = jnp.maximum(conv(x, w1), 0.0).astype(x.dtype)
    out = conv(h, w2) + x.astype(jnp.float32)
    return jnp.maximum(out, 0.0).astype(x.dtype)


if __name__ == "__main__":
    key = jax.random.PRNGKey(0)

    # --- Small default-shape test (small-C VPU path + L padding to 128). ---
    N, C, L = 2, 4, 16
    kx, k1, k2, key = jax.random.split(key, 4)
    x = jax.random.normal(kx, (N, C, L), dtype=jnp.float32)
    w1 = jax.random.normal(k1, (C, C, 3), dtype=jnp.float32) * 0.3
    w2 = jax.random.normal(k2, (C, C, 3), dtype=jnp.float32) * 0.3

    out = jax.block_until_ready(basic_block_1d_bn(x, w1, w2))
    ref = _reference(x, w1, w2)
    assert out.shape == (N, C, L)
    assert jnp.allclose(out, ref, atol=1e-5, rtol=1e-5), (
        float(jnp.max(jnp.abs(out - ref))))

    # --- Lane-dense / realistic-channel bf16 test (MXU K=3C path). ---
    N2, C2, L2 = 4, 128, 256
    kx, k1, k2, key = jax.random.split(key, 4)
    xb = jax.random.normal(kx, (N2, C2, L2), dtype=jnp.float32).astype(jnp.bfloat16)
    w1b = (jax.random.normal(k1, (C2, C2, 3), dtype=jnp.float32) * 0.05).astype(jnp.bfloat16)
    w2b = (jax.random.normal(k2, (C2, C2, 3), dtype=jnp.float32) * 0.05).astype(jnp.bfloat16)

    outb = jax.block_until_ready(basic_block_1d_bn(xb, w1b, w2b))
    refb = _reference(xb, w1b, w2b)
    assert outb.shape == (N2, C2, L2)
    assert jnp.allclose(outb.astype(jnp.float32), refb.astype(jnp.float32),
                        atol=5e-2, rtol=5e-2)

    print("KERNEL_OK")
</pallas_src>

<mosaic_0001>
module attributes {stable_mosaic.version = 11 : i64} {
  func.func @kernel(%arg0: i32, %arg1: memref<2x4x128xf32, #tpu.memory_space<vmem>>, %arg2: memref<4x12x1xf32, #tpu.memory_space<vmem>>, %arg3: memref<4x12x1xf32, #tpu.memory_space<vmem>>, %arg4: memref<2x4x128xf32, #tpu.memory_space<vmem>>) attributes {dimension_semantics = [#tpu.dimension_semantics<parallel>], iteration_bounds = array<i64: 1>, scalar_prefetch = 0 : i64, scratch_operands = 0 : i64, tpu.core_type = #tpu.core_type<tc>, window_params = [{transform_indices = @transform_0, window_bounds = array<i64: 2, 4, 128>}, {pipeline_mode = #tpu.pipeline_mode<synchronous>, transform_indices = @transform_1, window_bounds = array<i64: 4, 12, 1>}, {pipeline_mode = #tpu.pipeline_mode<synchronous>, transform_indices = @transform_2, window_bounds = array<i64: 4, 12, 1>}, {transform_indices = @transform_3, window_bounds = array<i64: 2, 4, 128>}]} {
    %c0 = arith.constant 0 : index
    %c0_0 = arith.constant 0 : index
    %c0_1 = arith.constant 0 : index
    %0 = vector.load %arg2[%c0, %c0_0, %c0_1] : memref<4x12x1xf32, #tpu.memory_space<vmem>>, vector<4x12x1xf32>
    %c0_2 = arith.constant 0 : index
    %c0_3 = arith.constant 0 : index
    %c0_4 = arith.constant 0 : index
    %1 = vector.load %arg3[%c0_2, %c0_3, %c0_4] : memref<4x12x1xf32, #tpu.memory_space<vmem>>, vector<4x12x1xf32>
    %c0_5 = arith.constant 0 : index
    %c0_6 = arith.constant 0 : index
    %c0_7 = arith.constant 0 : index
    %2 = vector.load %arg1[%c0_5, %c0_6, %c0_7] : memref<2x4x128xf32, #tpu.memory_space<vmem>>, vector<1x4x128xf32>
    %3 = vector.shape_cast %2 : vector<1x4x128xf32> to vector<4x128xf32>
    %4 = tpu.iota {dimensions = array<i32: 1>} : vector<4x128xi32>
    %cst = arith.constant 0.000000e+00 : f32
    %5 = vector.broadcast %cst : f32 to vector<4x128xf32>
    %c0_i32 = arith.constant 0 : i32
    %6 = vector.broadcast %c0_i32 : i32 to vector<4x128xi32>
    %7 = arith.cmpi eq, %4, %6 : vector<4x128xi32>
    %c1_i32 = arith.constant 1 : i32
    %8 = tpu.dynamic_rotate %3 by %c1_i32 dim 1 : vector<4x128xf32>, i32 -> vector<4x128xf32>
    %9 = arith.select %7, %5, %8 : vector<4x128xi1>, vector<4x128xf32>
    %c127_i32 = arith.constant 127 : i32
    %10 = vector.broadcast %c127_i32 : i32 to vector<4x128xi32>
    %11 = arith.cmpi eq, %4, %10 : vector<4x128xi32>
    %c127_i32_8 = arith.constant 127 : i32
    %12 = tpu.dynamic_rotate %3 by %c127_i32_8 dim 1 : vector<4x128xf32>, i32 -> vector<4x128xf32>
    %13 = arith.select %11, %5, %12 : vector<4x128xi1>, vector<4x128xf32>
    %14 = tpu.concatenate %9, %3, %13 in 0 : vector<4x128xf32>, vector<4x128xf32>, vector<4x128xf32> -> vector<12x128xf32>
    %15 = vector.shape_cast %14 : vector<12x128xf32> to vector<1x12x128xf32>
    %16 = vector.broadcast %0 : vector<4x12x1xf32> to vector<4x12x128xf32>
    %17 = vector.broadcast %15 : vector<1x12x128xf32> to vector<4x12x128xf32>
    %18 = arith.mulf %16, %17 : vector<4x12x128xf32>
    %cst_9 = arith.constant dense<0.000000e+00> : vector<4x128xf32>
    %19 = vector.multi_reduction <add>, %18, %cst_9 [1] : vector<4x12x128xf32> to vector<4x128xf32>
    %cst_10 = arith.constant 0.000000e+00 : f32
    %20 = vector.broadcast %cst_10 : f32 to vector<4x128xf32>
    %21 = arith.maximumf %19, %20 : vector<4x128xf32>
    %22 = tpu.iota {dimensions = array<i32: 1>} : vector<4x128xi32>
    %c16_i32 = arith.constant 16 : i32
    %23 = vector.broadcast %c16_i32 : i32 to vector<4x128xi32>
    %24 = arith.cmpi slt, %22, %23 : vector<4x128xi32>
    %cst_11 = arith.constant 0.000000e+00 : f32
    %25 = vector.broadcast %cst_11 : f32 to vector<4x128xf32>
    %26 = arith.select %24, %21, %25 : vector<4x128xi1>, vector<4x128xf32>
    %27 = tpu.iota {dimensions = array<i32: 1>} : vector<4x128xi32>
    %cst_12 = arith.constant 0.000000e+00 : f32
    %28 = vector.broadcast %cst_12 : f32 to vector<4x128xf32>
    %c0_i32_13 = arith.constant 0 : i32
    %29 = vector.broadcast %c0_i32_13 : i32 to vector<4x128xi32>
    %30 = arith.cmpi eq, %27, %29 : vector<4x128xi32>
    %c1_i32_14 = arith.constant 1 : i32
    %31 = tpu.dynamic_rotate %26 by %c1_i32_14 dim 1 : vector<4x128xf32>, i32 -> vector<4x128xf32>
    %32 = arith.select %30, %28, %31 : vector<4x128xi1>, vector<4x128xf32>
    %c127_i32_15 = arith.constant 127 : i32
    %33 = vector.broadcast %c127_i32_15 : i32 to vector<4x128xi32>
    %34 = arith.cmpi eq, %27, %33 : vector<4x128xi32>
    %c127_i32_16 = arith.constant 127 : i32
    %35 = tpu.dynamic_rotate %26 by %c127_i32_16 dim 1 : vector<4x128xf32>, i32 -> vector<4x128xf32>
    %36 = arith.select %34, %28, %35 : vector<4x128xi1>, vector<4x128xf32>
    %37 = tpu.concatenate %32, %26, %36 in 0 : vector<4x128xf32>, vector<4x128xf32>, vector<4x128xf32> -> vector<12x128xf32>
    %38 = vector.shape_cast %37 : vector<12x128xf32> to vector<1x12x128xf32>
    %39 = vector.broadcast %1 : vector<4x12x1xf32> to vector<4x12x128xf32>
    %40 = vector.broadcast %38 : vector<1x12x128xf32> to vector<4x12x128xf32>
    %41 = arith.mulf %39, %40 : vector<4x12x128xf32>
    %cst_17 = arith.constant dense<0.000000e+00> : vector<4x128xf32>
    %42 = vector.multi_reduction <add>, %41, %cst_17 [1] : vector<4x12x128xf32> to vector<4x128xf32>
    %43 = arith.addf %42, %3 : vector<4x128xf32>
    %cst_18 = arith.constant 0.000000e+00 : f32
    %44 = vector.broadcast %cst_18 : f32 to vector<4x128xf32>
    %45 = arith.maximumf %43, %44 : vector<4x128xf32>
    %c0_19 = arith.constant 0 : index
    %c0_20 = arith.constant 0 : index
    %c0_21 = arith.constant 0 : index
    %46 = vector.load %arg4[%c0_19, %c0_20, %c0_21] : memref<2x4x128xf32, #tpu.memory_space<vmem>>, vector<1x4x128xf32>
    %47 = vector.shape_cast %46 : vector<1x4x128xf32> to vector<4x128xf32>
    %48 = vector.shape_cast %45 : vector<4x128xf32> to vector<1x4x128xf32>
    tpu.vector_store %arg4[%c0_19, %c0_20, %c0_21], %48 {strides = array<i32>} : memref<2x4x128xf32, #tpu.memory_space<vmem>>, vector<1x4x128xf32>,
    %c1 = arith.constant 1 : index
    %c0_22 = arith.constant 0 : index
    %c0_23 = arith.constant 0 : index
    %49 = vector.load %arg1[%c1, %c0_22, %c0_23] : memref<2x4x128xf32, #tpu.memory_space<vmem>>, vector<1x4x128xf32>
    %50 = vector.shape_cast %49 : vector<1x4x128xf32> to vector<4x128xf32>
    %51 = tpu.iota {dimensions = array<i32: 1>} : vector<4x128xi32>
    %cst_24 = arith.constant 0.000000e+00 : f32
    %52 = vector.broadcast %cst_24 : f32 to vector<4x128xf32>
    %c0_i32_25 = arith.constant 0 : i32
    %53 = vector.broadcast %c0_i32_25 : i32 to vector<4x128xi32>
    %54 = arith.cmpi eq, %51, %53 : vector<4x128xi32>
    %c1_i32_26 = arith.constant 1 : i32
    %55 = tpu.dynamic_rotate %50 by %c1_i32_26 dim 1 : vector<4x128xf32>, i32 -> vector<4x128xf32>
    %56 = arith.select %54, %52, %55 : vector<4x128xi1>, vector<4x128xf32>
    %c127_i32_27 = arith.constant 127 : i32
    %57 = vector.broadcast %c127_i32_27 : i32 to vector<4x128xi32>
    %58 = arith.cmpi eq, %51, %57 : vector<4x128xi32>
    %c127_i32_28 = arith.constant 127 : i32
    %59 = tpu.dynamic_rotate %50 by %c127_i32_28 dim 1 : vector<4x128xf32>, i32 -> vector<4x128xf32>
    %60 = arith.select %58, %52, %59 : vector<4x128xi1>, vector<4x128xf32>
    %61 = tpu.concatenate %56, %50, %60 in 0 : vector<4x128xf32>, vector<4x128xf32>, vector<4x128xf32> -> vector<12x128xf32>
    %62 = vector.shape_cast %61 : vector<12x128xf32> to vector<1x12x128xf32>
    %63 = vector.broadcast %0 : vector<4x12x1xf32> to vector<4x12x128xf32>
    %64 = vector.broadcast %62 : vector<1x12x128xf32> to vector<4x12x128xf32>
    %65 = arith.mulf %63, %64 : vector<4x12x128xf32>
    %cst_29 = arith.constant dense<0.000000e+00> : vector<4x128xf32>
    %66 = vector.multi_reduction <add>, %65, %cst_29 [1] : vector<4x12x128xf32> to vector<4x128xf32>
    %cst_30 = arith.constant 0.000000e+00 : f32
    %67 = vector.broadcast %cst_30 : f32 to vector<4x128xf32>
    %68 = arith.maximumf %66, %67 : vector<4x128xf32>
    %69 = tpu.iota {dimensions = array<i32: 1>} : vector<4x128xi32>
    %c16_i32_31 = arith.constant 16 : i32
    %70 = vector.broadcast %c16_i32_31 : i32 to vector<4x128xi32>
    %71 = arith.cmpi slt, %69, %70 : vector<4x128xi32>
    %cst_32 = arith.constant 0.000000e+00 : f32
    %72 = vector.broadcast %cst_32 : f32 to vector<4x128xf32>
    %73 = arith.select %71, %68, %72 : vector<4x128xi1>, vector<4x128xf32>
    %74 = tpu.iota {dimensions = array<i32: 1>} : vector<4x128xi32>
    %cst_33 = arith.constant 0.000000e+00 : f32
    %75 = vector.broadcast %cst_33 : f32 to vector<4x128xf32>
    %c0_i32_34 = arith.constant 0 : i32
    %76 = vector.broadcast %c0_i32_34 : i32 to vector<4x128xi32>
    %77 = arith.cmpi eq, %74, %76 : vector<4x128xi32>
    %c1_i32_35 = arith.constant 1 : i32
    %78 = tpu.dynamic_rotate %73 by %c1_i32_35 dim 1 : vector<4x128xf32>, i32 -> vector<4x128xf32>
    %79 = arith.select %77, %75, %78 : vector<4x128xi1>, vector<4x128xf32>
    %c127_i32_36 = arith.constant 127 : i32
    %80 = vector.broadcast %c127_i32_36 : i32 to vector<4x128xi32>
    %81 = arith.cmpi eq, %74, %80 : vector<4x128xi32>
    %c127_i32_37 = arith.constant 127 : i32
    %82 = tpu.dynamic_rotate %73 by %c127_i32_37 dim 1 : vector<4x128xf32>, i32 -> vector<4x128xf32>
    %83 = arith.select %81, %75, %82 : vector<4x128xi1>, vector<4x128xf32>
    %84 = tpu.concatenate %79, %73, %83 in 0 : vector<4x128xf32>, vector<4x128xf32>, vector<4x128xf32> -> vector<12x128xf32>
    %85 = vector.shape_cast %84 : vector<12x128xf32> to vector<1x12x128xf32>
    %86 = vector.broadcast %1 : vector<4x12x1xf32> to vector<4x12x128xf32>
    %87 = vector.broadcast %85 : vector<1x12x128xf32> to vector<4x12x128xf32>
    %88 = arith.mulf %86, %87 : vector<4x12x128xf32>
    %cst_38 = arith.constant dense<0.000000e+00> : vector<4x128xf32>
    %89 = vector.multi_reduction <add>, %88, %cst_38 [1] : vector<4x12x128xf32> to vector<4x128xf32>
    %90 = arith.addf %89, %50 : vector<4x128xf32>
    %cst_39 = arith.constant 0.000000e+00 : f32
    %91 = vector.broadcast %cst_39 : f32 to vector<4x128xf32>
    %92 = arith.maximumf %90, %91 : vector<4x128xf32>
    %c1_40 = arith.constant 1 : index
    %c0_41 = arith.constant 0 : index
    %c0_42 = arith.constant 0 : index
    %93 = vector.load %arg4[%c1_40, %c0_41, %c0_42] : memref<2x4x128xf32, #tpu.memory_space<vmem>>, vector<1x4x128xf32>
    %94 = vector.shape_cast %93 : vector<1x4x128xf32> to vector<4x128xf32>
    %95 = vector.shape_cast %92 : vector<4x128xf32> to vector<1x4x128xf32>
    tpu.vector_store %arg4[%c1_40, %c0_41, %c0_42], %95 {strides = array<i32>} : memref<2x4x128xf32, #tpu.memory_space<vmem>>, vector<1x4x128xf32>,
    return
  }
  func.func @transform_0(%arg0: i32) -> (i32, i32, i32) {
    %c0_i32 = arith.constant 0 : i32
    %c0_i32_0 = arith.constant 0 : i32
    %c0_i32_1 = arith.constant 0 : i32
    return %arg0, %c0_i32, %c0_i32_0 : i32, i32, i32
  }
  func.func @transform_1(%arg0: i32) -> (i32, i32, i32) {
    %c0_i32 = arith.constant 0 : i32
    %c0_i32_0 = arith.constant 0 : i32
    %c0_i32_1 = arith.constant 0 : i32
    %c0_i32_2 = arith.constant 0 : i32
    return %c0_i32, %c0_i32_0, %c0_i32_1 : i32, i32, i32
  }
  func.func @transform_2(%arg0: i32) -> (i32, i32, i32) {
    %c0_i32 = arith.constant 0 : i32
    %c0_i32_0 = arith.constant 0 : i32
    %c0_i32_1 = arith.constant 0 : i32
    %c0_i32_2 = arith.constant 0 : i32
    return %c0_i32, %c0_i32_0, %c0_i32_1 : i32, i32, i32
  }
  func.func @transform_3(%arg0: i32) -> (i32, i32, i32) {
    %c0_i32 = arith.constant 0 : i32
    %c0_i32_0 = arith.constant 0 : i32
    %c0_i32_1 = arith.constant 0 : i32
    return %arg0, %c0_i32, %c0_i32_0 : i32, i32, i32
  }
}

</mosaic_0001>

<bundles_post_ra>
// kernel: tpu_custom_call.1
= control target key start
LH: loop header
LB: loop body
LE: loop exit
PB: predicated region body
PF: predicated region fallthrough
CT: control target
= control target key end

     0   :  { %v458_v2 = vmov 0   ;;  %s459_s16 = smov 1   ;;  %s620_s0 = inlined_call_operand.vmem [shape: f32[2,4,128], index: 0, kind: input, shape index: {}]   ;;  %s621_s1 = inlined_call_operand.vmem [shape: f32[4,12,1], index: 1, kind: input, shape index: {}]   ;;  %s622_s2 = inlined_call_operand.vmem [shape: f32[4,12,1], index: 2, kind: input, shape index: {}]   ;;  %s623_s3 = inlined_call_operand.hbm [shape: f32[2,4,128], index: 3, kind: output, shape index: {}]  }
   0x1   :  { %v487_v0 = vld [vmem:[%s620_s0 + $0x4] sm:$0xf]  ;;  %v492_v1 = vld [vmem:[%s620_s0] sm:$0xf]  ;;  %429 = vset.pattern.permute.xlu2 %v458_v2  ;;  %v16_v3 = vld [vmem:[%s621_s1 + $0x8] sm:$0xf]  ;;  %431 = vset.pattern.permute.xlu1 %v458_v2 }
   0x2   :  { %263 = vrot.lane.b32.xlu1 %v487_v0, %s459_s16  ;;  %35 = vrot.lane.b32.xlu0 %v492_v1, %s459_s16 }
   0x3   :  { %54 = vperm.xlu2 %429, %v16_v3   ;;  %430 = vset.pattern.permute.xlu0 %v458_v2 }
   0x4   :  { %8 = vsyncpa [#allocation3], 0  ;;  %v18_v4 = vld [vmem:[%s621_s1 + $0x18] sm:$0xf]  ;;  %s460_s20 = smov 127   ;;  %v17_v5 = vld [vmem:[%s621_s1 + $0x10] sm:$0xff]  ;;  %v32_v20 = vlaneseq }
   0x5   :  { %v15_v6 = vld [vmem:[%s621_s1] sm:$0xff]  ;;  %v20_v7 = vld [vmem:[%s621_s1 + $0x28] sm:$0xf]  ;;  %v21_v9 = vld [vmem:[%s621_s1 + $0x30] sm:$0xff]  ;;  %v270_v27 = vrot.slane %v487_v0, 4  ;;  %v43_v28 = vrot.slane %v492_v1, 4 }
   0x6   :  { %v19_v8 = vld [vmem:[%s621_s1 + $0x20] sm:$0xff]  ;;  %v22_v10 = vld [vmem:[%s621_s1 + $0x38] sm:$0xf]  ;;  %v28_v11 = vld [vmem:[%s622_s2 + $0x28] sm:$0xf]  ;;  %v541_v22 = vand.u32 127, %v32_v20 }
   0x7   :  { %v25_v12 = vld [vmem:[%s622_s2 + $0x10] sm:$0xff]  ;;  %v26_v13 = vld [vmem:[%s622_s2 + $0x18] sm:$0xf]  ;;  %v27_v14 = vld [vmem:[%s622_s2 + $0x20] sm:$0xff]  ;;  %vm45_vm2 = vcmask 1043456   ;;  %vm136_vm3 = vcmask 1041409  }
   0x8   :  { %v24_v15 = vld [vmem:[%s622_s2 + $0x8] sm:$0xf]  ;;  %vm38_vm0 = vcmp.eq.s32.totalorder %v541_v22, 127  ;;  %vm34_vm1 = vcmp.eq.s32.totalorder %v541_v22, 0  ;;  %vm138_vm4 = vcmask 1042434   ;;  %vm131_vm5 = vcmp.lt.s32.totalorder %v541_v22, 16 }
   0x9   :  { %vm140_vm6 = vcmask 1043459   ;;  %s410_s23 = sshll.u32 %s623_s3, 4  ;;  %s462_s24 = smov 64   ;;  %s411_s23 = int_to_ptr.hbm [resolvable:$true] %s410_s23 }
   0xa   :  { %266 = vrot.lane.b32.xlu1 %v487_v0, %s460_s20  ;;  %39 = vrot.lane.b32.xlu0 %v492_v1, %s460_s20  ;;  %s463_s25 = smov 4  }
   0xb   :  { %64 = vperm.xlu2 %429, %v18_v4  }
  0x12   :  { %59 = vperm.xlu1 %431, %v17_v5   ;;  %49 = vperm.xlu0 %430, %v15_v6  }
  0x13   :  { %74 = vperm.xlu2 %429, %v20_v7  }
  0x1a   :  { %69 = vperm.xlu1 %431, %v19_v8   ;;  %79 = vperm.xlu0 %430, %v21_v9  }
  0x1b   :  { %84 = vperm.xlu2 %429, %v22_v10  }
  0x22   :  { %181 = vperm.xlu1 %431, %v28_v11   ;;  %166 = vperm.xlu0 %430, %v25_v12  }
  0x23   :  { %171 = vperm.xlu2 %429, %v26_v13  }
  0x2a   :  { %176 = vperm.xlu0 %430, %v27_v14  }
  0x2b   :  { %161 = vperm.xlu2 %429, %v24_v15  }
  0x5d   :  { %v55_v16 = vpop.permute.xlu2 %54 }
  0x65   :  { %v65_v17 = vpop.permute.xlu2 %64 }
  0x6d   :  { %v75_v21 = vpop.permute.xlu2 %74 }
  0x74   :  { %v264_v18 = vpop.permute.xlu1 %263  ;;  %v36_v19 = vpop.permute.xlu0 %35 }
  0x75   :  { %v265_v29 = vsel %vm34_vm1, 0.0, %v264_v18  ;;  %v37_v30 = vsel %vm34_vm1, 0.0, %v36_v19  ;;  %v85_v37 = vpop.permute.xlu2 %84 }
  0x76   :  { %v272_v35 = vsel %vm45_vm2, %v265_v29, %v270_v27  ;;  %v46_v36 = vsel %vm45_vm2, %v37_v30, %v43_v28 }
  0x7c   :  { %v267_v23 = vpop.permute.xlu1 %266  ;;  %v40_v24 = vpop.permute.xlu0 %39 }
  0x7d   :  { %v268_v25 = vsel %vm38_vm0, 0.0, %v267_v23  ;;  %v41_v26 = vsel %vm38_vm0, 0.0, %v40_v24 }
  0x7e   :  { %v276_v31 = vmul.f32 %v268_v25, %v65_v17  ;;  %v90_v32 = vmul.f32 %v65_v17, %v41_v26  ;;  %v274_v33 = vmul.f32 %v268_v25, %v55_v16  ;;  %v88_v34 = vmul.f32 %v55_v16, %v41_v26 }
  0x7f   :  { %v278_v39 = vmul.f32 %v268_v25, %v75_v21  ;;  %v280_v40 = vmul.f32 %v268_v25, %v85_v37  ;;  %v92_v52 = vmul.f32 %v75_v21, %v41_v26  ;;  %v94_v53 = vmul.f32 %v85_v37, %v41_v26 }
  0x80   :  { %v103_v44 = vsel %vm45_vm2, %v90_v32, 0.0  ;;  %v289_v45 = vsel %vm45_vm2, %v276_v31, 0.0  ;;  %v95_v50 = vsel %vm45_vm2, %v88_v34, 0.0  ;;  %v281_v51 = vsel %vm45_vm2, %v274_v33, 0.0 }
  0x81   :  { %v297_v62 = vsel %vm45_vm2, %v278_v39, 0.0  ;;  %v305_v63 = vsel %vm45_vm2, %v280_v40, 0.0  ;;  %v111_v5 = vsel %vm45_vm2, %v92_v52, 0.0  ;;  %v119_v6 = vsel %vm45_vm2, %v94_v53, 0.0 }
  0x84   :  { %v60_v38 = vpop.permute.xlu1 %59  ;;  %v50_v43 = vpop.permute.xlu0 %49 }
  0x85   :  { %v89_v41 = vmul.f32 %v60_v38, %v46_v36  ;;  %v275_v42 = vmul.f32 %v272_v35, %v60_v38  ;;  %v87_v46 = vmul.f32 %v50_v43, %v46_v36  ;;  %v273_v47 = vmul.f32 %v272_v35, %v50_v43 }
  0x87   :  { %v104_v48 = vadd.f32 %v103_v44, %v89_v41  ;;  %v290_v49 = vadd.f32 %v289_v45, %v275_v42  ;;  %v96_v54 = vadd.f32 %v95_v50, %v87_v46  ;;  %v282_v55 = vadd.f32 %v281_v51, %v273_v47 }
  0x89   :  { %v105_v56 = vrot.slane %v104_v48, 4  ;;  %v291_v57 = vrot.slane %v290_v49, 4  ;;  %v97_v58 = vrot.slane %v96_v54, 4  ;;  %v283_v59 = vrot.slane %v282_v55, 4 }
  0x8b   :  { %v106_v60 = vadd.f32 %v105_v56, %v104_v48  ;;  %v292_v61 = vadd.f32 %v291_v57, %v290_v49  ;;  %v98_v2 = vadd.f32 %v97_v58, %v96_v54  ;;  %v284_v3 = vadd.f32 %v283_v59, %v282_v55 }
  0x8c   :  { %v70_v4 = vpop.permute.xlu1 %69  ;;  %v80_v11 = vpop.permute.xlu0 %79 }
  0x8d   :  { %v107_v7 = vrot.slane %v106_v60, 2  ;;  %v293_v8 = vrot.slane %v292_v61, 2  ;;  %v91_v9 = vmul.f32 %v70_v4, %v46_v36  ;;  %v277_v10 = vmul.f32 %v272_v35, %v70_v4 }
  0x8e   :  { %v99_v12 = vrot.slane %v98_v2, 2  ;;  %v285_v13 = vrot.slane %v284_v3, 2  ;;  %v93_v14 = vmul.f32 %v80_v11, %v46_v36  ;;  %v279_v15 = vmul.f32 %v272_v35, %v80_v11  ;;  %v29_v11 = vld [vmem:[%s622_s2 + $0x30] sm:$0xff] }
  0x8f   :  { %v108_v16 = vadd.f32 %v107_v7, %v106_v60  ;;  %v294_v17 = vadd.f32 %v293_v8, %v292_v61  ;;  %v112_v18 = vadd.f32 %v111_v5, %v91_v9  ;;  %v298_v19 = vadd.f32 %v297_v62, %v277_v10 }
  0x90   :  { %v100_v20 = vadd.f32 %v99_v12, %v98_v2  ;;  %v286_v21 = vadd.f32 %v285_v13, %v284_v3  ;;  %v120_v23 = vadd.f32 %v119_v6, %v93_v14  ;;  %v306_v24 = vadd.f32 %v305_v63, %v279_v15  ;;  %v23_v12 = vld [vmem:[%s622_s2] sm:$0xff]  ;;  %v30_v13 = vld [vmem:[%s622_s2 + $0x38] sm:$0xf]  ;;  %v172_v14 = vpop.permute.xlu2 %171  ;;  %s461_s2 = smov [#allocation2]  }
  0x91   :  { %v109_v25 = vrot.slane %v108_v16, 1  ;;  %v295_v26 = vrot.slane %v294_v17, 1  ;;  %v113_v27 = vrot.slane %v112_v18, 4  ;;  %v299_v28 = vrot.slane %v298_v19, 4 }
  0x92   :  { %v101_v29 = vrot.slane %v100_v20, 1  ;;  %v287_v30 = vrot.slane %v286_v21, 1  ;;  %v121_v31 = vrot.slane %v120_v23, 4  ;;  %v307_v32 = vrot.slane %v306_v24, 4 }
  0x93   :  { %v114_v33 = vadd.f32 %v113_v27, %v112_v18  ;;  %v300_v34 = vadd.f32 %v299_v28, %v298_v19  ;;  %v110_v37 = vadd.f32 %v109_v25, %v108_v16  ;;  %v296_v38 = vadd.f32 %v295_v26, %v294_v17 }
  0x94   :  { %v122_v36 = vadd.f32 %v121_v31, %v120_v23  ;;  %v308_v35 = vadd.f32 %v307_v32, %v306_v24  ;;  %v102_v41 = vadd.f32 %v101_v29, %v100_v20  ;;  %v288_v42 = vadd.f32 %v287_v30, %v286_v21  ;;  %v167_v16 = vpop.permute.xlu0 %166  ;;  %v182_v17 = vpop.permute.xlu1 %181 }
  0x95   :  { %v115_v39 = vrot.slane %v114_v33, 2  ;;  %v301_v40 = vrot.slane %v300_v34, 2  ;;  %v128_v49 = vmax.f32 %v110_v37, 0.0  ;;  %v314_v50 = vmax.f32 %v296_v38, 0.0 }
  0x96   :  { %v123_v43 = vrot.slane %v122_v36, 2  ;;  %v309_v44 = vrot.slane %v308_v35, 2  ;;  %v127_v53 = vmax.f32 %v102_v41, 0.0  ;;  %v313_v54 = vmax.f32 %v288_v42, 0.0 }
  0x97   :  { %v116_v45 = vadd.f32 %v115_v39, %v114_v33  ;;  %v302_v46 = vadd.f32 %v301_v40, %v300_v34 }
  0x98   :  { %v124_v47 = vadd.f32 %v123_v43, %v122_v36  ;;  %v310_v48 = vadd.f32 %v309_v44, %v308_v35  ;;  %v321_v2 = vsel %vm136_vm3, %v314_v50, %v313_v54  ;;  %v137_v4 = vsel %vm136_vm3, %v128_v49, %v127_v53  ;;  %v162_v15 = vpop.permute.xlu2 %161 }
  0x99   :  { %v117_v51 = vrot.slane %v116_v45, 1  ;;  %v303_v52 = vrot.slane %v302_v46, 1 }
  0x9a   :  { %v311_v55 = vrot.slane %v310_v48, 1  ;;  %v125_v56 = vrot.slane %v124_v47, 1 }
  0x9b   :  { %v118_v57 = vadd.f32 %v117_v51, %v116_v45  ;;  %v304_v58 = vadd.f32 %v303_v52, %v302_v46 }
  0x9c   :  { %v312_v59 = vadd.f32 %v311_v55, %v310_v48  ;;  %v126_v60 = vadd.f32 %v125_v56, %v124_v47  ;;  %v177_v19 = vpop.permute.xlu0 %176 }
  0x9d   :  { %v315_v61 = vmax.f32 %v304_v58, 0.0  ;;  %v129_v62 = vmax.f32 %v118_v57, 0.0 }
  0x9e   :  { %v316_v63 = vmax.f32 %v312_v59, 0.0  ;;  %v130_v3 = vmax.f32 %v126_v60, 0.0 }
  0x9f   :  { %v322_v5 = vsel %vm138_vm4, %v315_v61, %v321_v2  ;;  %v139_v6 = vsel %vm138_vm4, %v129_v62, %v137_v4 }
  0xa0   :  { %v323_v7 = vsel %vm140_vm6, %v316_v63, %v322_v5  ;;  %v141_v8 = vsel %vm140_vm6, %v130_v3, %v139_v6 }
  0xa1   :  { %v325_v9 = vsel %vm131_vm5, %v323_v7, 0.0  ;;  %v143_v10 = vsel %vm131_vm5, %v141_v8, 0.0 }
  0xa2   :  { %326 = vrot.lane.b32.xlu0 %v325_v9, %s459_s16  ;;  %147 = vrot.lane.b32.xlu2 %v143_v10, %s460_s20  ;;  %v151_v21 = vrot.slane %v143_v10, 4  ;;  %v333_v41 = vrot.slane %v325_v9, 4 }
  0xa3   :  { %144 = vrot.lane.b32.xlu1 %v143_v10, %s459_s16  ;;  %s408_s16 = sshll.u32 %s461_s2, 4  ;;  %s409_s16 = int_to_ptr.vmem [resolvable:$true] %s408_s16 }
  0xaa   :  { %186 = vperm.xlu0 %430, %v29_v11   ;;  %156 = vperm.xlu2 %429, %v23_v12  }
  0xab   :  { %329 = vrot.lane.b32.xlu1 %v325_v9, %s460_s20 }
  0xb3   :  { %191 = vperm.xlu1 %431, %v30_v13  }
  0xfc   :  { %v148_v18 = vpop.permute.xlu2 %147 }
  0xfd   :  { %v149_v20 = vsel %vm38_vm0, 0.0, %v148_v18 }
  0xfe   :  { %v195_v23 = vmul.f32 %v162_v15, %v149_v20  ;;  %v197_v24 = vmul.f32 %v172_v14, %v149_v20  ;;  %v199_v25 = vmul.f32 %v182_v17, %v149_v20 }
 0x100   :  { %v202_v34 = vsel %vm45_vm2, %v195_v23, 0.0  ;;  %v210_v36 = vsel %vm45_vm2, %v197_v24, 0.0  ;;  %v218_v35 = vsel %vm45_vm2, %v199_v25, 0.0 }
 0x104   :  { %v157_v28 = vpop.permute.xlu2 %156 }
 0x114   :  { %v327_v30 = vpop.permute.xlu0 %326 }
 0x115   :  { %v145_v26 = vpop.permute.xlu1 %144  ;;  %v328_v40 = vsel %vm34_vm1, 0.0, %v327_v30 }
 0x116   :  { %v146_v27 = vsel %vm34_vm1, 0.0, %v145_v26  ;;  %v335_v45 = vsel %vm45_vm2, %v328_v40, %v333_v41  ;;  %v234_v26 = vrot.slane %v492_v1, 1  ;;  %v235_v40 = vrot.slane %v492_v1, 2 }
 0x117   :  { %v153_v29 = vsel %vm45_vm2, %v146_v27, %v151_v21  ;;  %v336_v55 = vmul.f32 %v335_v45, %v157_v28  ;;  %v338_v56 = vmul.f32 %v335_v45, %v167_v16  ;;  %v340_v57 = vmul.f32 %v335_v45, %v177_v19 }
 0x118   :  { %v194_v31 = vmul.f32 %v157_v28, %v153_v29  ;;  %v196_v32 = vmul.f32 %v167_v16, %v153_v29  ;;  %v198_v33 = vmul.f32 %v177_v19, %v153_v29 }
 0x11a   :  { %v203_v37 = vadd.f32 %v202_v34, %v194_v31  ;;  %v211_v38 = vadd.f32 %v210_v36, %v196_v32  ;;  %v219_v39 = vadd.f32 %v218_v35, %v198_v33  ;;  %v376_v36 = vrot.slane %v487_v0, 1 }
 0x11c   :  { %v204_v42 = vrot.slane %v203_v37, 4  ;;  %v212_v43 = vrot.slane %v211_v38, 4  ;;  %v220_v44 = vrot.slane %v219_v39, 4  ;;  %v187_v7 = vpop.permute.xlu0 %186 }
 0x11d   :  { %v330_v46 = vpop.permute.xlu1 %329  ;;  %v200_v18 = vmul.f32 %v187_v7, %v153_v29  ;;  %v342_v19 = vmul.f32 %v335_v45, %v187_v7 }
 0x11e   :  { %v213_v47 = vadd.f32 %v212_v43, %v211_v38  ;;  %v221_v48 = vadd.f32 %v220_v44, %v219_v39  ;;  %v331_v49 = vsel %vm38_vm0, 0.0, %v330_v46  ;;  %v205_v53 = vadd.f32 %v204_v42, %v203_v37 }
 0x11f   :  { %v337_v50 = vmul.f32 %v331_v49, %v162_v15  ;;  %v339_v51 = vmul.f32 %v331_v49, %v172_v14  ;;  %v341_v52 = vmul.f32 %v331_v49, %v182_v17  ;;  %v377_v43 = vrot.slane %v487_v0, 2 }
 0x120   :  { %v214_v54 = vrot.slane %v213_v47, 2  ;;  %v222_v62 = vrot.slane %v221_v48, 2  ;;  %v206_v3 = vrot.slane %v205_v53, 2 }
 0x121   :  { %v344_v58 = vsel %vm45_vm2, %v337_v50, 0.0  ;;  %v352_v59 = vsel %vm45_vm2, %v339_v51, 0.0  ;;  %v360_v60 = vsel %vm45_vm2, %v341_v52, 0.0 }
 0x122   :  { %v215_v61 = vadd.f32 %v214_v54, %v213_v47  ;;  %v345_v63 = vadd.f32 %v344_v58, %v336_v55  ;;  %v353_v2 = vadd.f32 %v352_v59, %v338_v56  ;;  %v361_v22 = vadd.f32 %v360_v60, %v340_v57 }
 0x123   :  { %v223_v10 = vadd.f32 %v222_v62, %v221_v48  ;;  %v207_v16 = vadd.f32 %v206_v3, %v205_v53  ;;  %v236_v59 = vrot.slane %v492_v1, 3  ;;  %v378_v60 = vrot.slane %v487_v0, 3 }
 0x124   :  { %v346_v4 = vrot.slane %v345_v63, 4  ;;  %v354_v5 = vrot.slane %v353_v2, 4  ;;  %v362_v6 = vrot.slane %v361_v22, 4  ;;  %v216_v9 = vrot.slane %v215_v61, 1 }
 0x125   :  { %v192_v8 = vpop.permute.xlu1 %191  ;;  %v224_v28 = vrot.slane %v223_v10, 1  ;;  %v208_v34 = vrot.slane %v207_v16, 1 }
 0x126   :  { %v347_v11 = vadd.f32 %v346_v4, %v345_v63  ;;  %v355_v12 = vadd.f32 %v354_v5, %v353_v2  ;;  %v363_v13 = vadd.f32 %v362_v6, %v361_v22  ;;  %v201_v14 = vmul.f32 %v192_v8, %v149_v20 }
 0x127   :  { %v343_v15 = vmul.f32 %v331_v49, %v192_v8  ;;  %v217_v27 = vadd.f32 %v216_v9, %v215_v61  ;;  %v225_v41 = vadd.f32 %v224_v28, %v223_v10  ;;  %v209_v48 = vadd.f32 %v208_v34, %v207_v16 }
 0x128   :  { %v348_v17 = vrot.slane %v347_v11, 2  ;;  %v356_v21 = vrot.slane %v355_v12, 2  ;;  %v364_v23 = vrot.slane %v363_v13, 2  ;;  %v226_v24 = vsel %vm45_vm2, %v201_v14, 0.0 }
 0x129   :  { %v368_v25 = vsel %vm45_vm2, %v343_v15, 0.0  ;;  %v227_v33 = vadd.f32 %v226_v24, %v200_v18  ;;  %v242_v42 = vadd.f32 %v234_v26, %v217_v27  ;;  %v243_v53 = vadd.f32 %v235_v40, %v225_v41 }
 0x12a   :  { %v349_v30 = vadd.f32 %v348_v17, %v347_v11  ;;  %v357_v31 = vadd.f32 %v356_v21, %v355_v12  ;;  %v365_v32 = vadd.f32 %v364_v23, %v363_v13  ;;  %v369_v20 = vadd.f32 %v368_v25, %v342_v19 }
 0x12b   :  { %v228_v38 = vrot.slane %v227_v33, 4  ;;  %v246_v55 = vmax.f32 %v242_v42, 0.0  ;;  %v241_v61 = vadd.f32 %v209_v48, %v492_v1  ;;  %v247_v22 = vmax.f32 %v243_v53, 0.0 }
 0x12c   :  { %v350_v29 = vrot.slane %v349_v30, 1  ;;  %v358_v35 = vrot.slane %v357_v31, 1  ;;  %v366_v37 = vrot.slane %v365_v32, 1  ;;  %v370_v39 = vrot.slane %v369_v20, 4 }
 0x12d   :  { %v229_v46 = vadd.f32 %v228_v38, %v227_v33  ;;  %v253_v4 = vrot.slane %v246_v55, 7  ;;  %v245_v8 = vmax.f32 %v241_v61, 0.0  ;;  %v255_v12 = vrot.slane %v247_v22, 6 }
 0x12e   :  { %v359_v44 = vadd.f32 %v358_v35, %v357_v31  ;;  %v367_v45 = vadd.f32 %v366_v37, %v365_v32  ;;  %v371_v47 = vadd.f32 %v370_v39, %v369_v20  ;;  %v351_v49 = vadd.f32 %v350_v29, %v349_v30 }
 0x12f   :  { %v230_v51 = vrot.slane %v229_v46, 2  ;;  %v254_v1 = vsel %vm136_vm3, %v253_v4, %v245_v8 }
 0x130   :  { %v384_v50 = vadd.f32 %v376_v36, %v359_v44  ;;  %v372_v52 = vrot.slane %v371_v47, 2  ;;  %v385_v54 = vadd.f32 %v377_v43, %v367_v45  ;;  %v383_v62 = vadd.f32 %v487_v0, %v351_v49 }
 0x131   :  { %v231_v57 = vadd.f32 %v230_v51, %v229_v46  ;;  %v256_v18 = vsel %vm138_vm4, %v255_v12, %v254_v1 }
 0x132   :  { %v388_v56 = vmax.f32 %v384_v50, 0.0  ;;  %v373_v58 = vadd.f32 %v372_v52, %v371_v47  ;;  %v389_v3 = vmax.f32 %v385_v54, 0.0  ;;  %v387_v9 = vmax.f32 %v383_v62, 0.0 }
 0x133   :  { %v232_v63 = vrot.slane %v231_v57, 1 }
 0x134   :  { %v374_v2 = vrot.slane %v373_v58, 1  ;;  %v395_v5 = vrot.slane %v388_v56, 7  ;;  %v397_v13 = vrot.slane %v389_v3, 6 }
 0x135   :  { %v233_v6 = vadd.f32 %v232_v63, %v231_v57 }
 0x136   :  { %v375_v7 = vadd.f32 %v374_v2, %v373_v58  ;;  %v396_v0 = vsel %vm136_vm3, %v395_v5, %v387_v9 }
 0x137   :  { %v244_v10 = vadd.f32 %v236_v59, %v233_v6  ;;  %v398_v19 = vsel %vm138_vm4, %v397_v13, %v396_v0 }
 0x138   :  { %v386_v11 = vadd.f32 %v378_v60, %v375_v7 }
 0x139   :  { %v248_v14 = vmax.f32 %v244_v10, 0.0 }
 0x13a   :  { %v390_v15 = vmax.f32 %v386_v11, 0.0 }
 0x13b   :  { %v257_v16 = vrot.slane %v248_v14, 5 }
 0x13c   :  { %v399_v17 = vrot.slane %v390_v15, 5 }
 0x13d   :  { %v258_v21 = vsel %vm140_vm6, %v257_v16, %v256_v18 }
 0x13e   :  { %v400_v23 = vsel %vm140_vm6, %v399_v17, %v398_v19  ;;  %260 = vst [vmem:[#allocation2] sm:$0xf] %v258_v21 }
 0x13f   :  { %403 = vst [vmem:[#allocation2 + $0x4] sm:$0xf] %v400_v23 }
 0x140   :  { %416 = dma.vmem_to_hbm [thread:$0]  %s409_s16, 128, %s411_s23, [#allocation3], %s462_s24, %s462_s24, %s463_s25  }
 0x141   :  { %456 = dma.done.wait [#allocation3], 128  }
 0x142   :  { %457 = vsyncadd [#allocation3], 4294967168 }
 0x143   :  { %421 = vsyncpa [#allocation3], 1 }

</bundles_post_ra>
